<compile_context>
chip_gen: v7x
topology: tpu7x:2x2x1
jax: 0.10.0
libtpu: 0.0.40
codegen_flags: <defaults>
</compile_context>

<pallas_src>
import functools

import jax
import jax.numpy as jnp
from jax.experimental import pallas as pl
from jax.experimental.pallas import tpu as pltpu


def _embed_kernel(ids_ref, table_ref, out_ref, acc_ref):
    # ids_ref:   (T, 1) int32   -- token ids for this token block (sublane axis)
    # table_ref: (TV, D)        -- current vocab block of the embedding table
    # out_ref:   (T, D)
    # acc_ref:   (T, D) float32 -- accumulator across vocab blocks
    j = pl.program_id(1)

    @pl.when(j == 0)
    def _():
        acc_ref[...] = jnp.zeros_like(acc_ref)

    ids = ids_ref[...]                                       # (T, 1)
    t = out_ref.shape[0]
    tv = table_ref.shape[0]
    # Global vocab index of each column of this vocab block.
    vocab_idx = j * tv + jax.lax.broadcasted_iota(jnp.int32, (t, tv), 1)
    onehot = (vocab_idx == ids).astype(table_ref.dtype)      # (T, TV)
    acc_ref[...] += jnp.dot(onehot, table_ref[...],
                            preferred_element_type=jnp.float32)

    @pl.when(j == pl.num_programs(1) - 1)
    def _():
        out_ref[...] = acc_ref[...].astype(out_ref.dtype)


def _round_up(x: int, m: int) -> int:
    return ((x + m - 1) // m) * m


@functools.partial(jax.jit, static_argnames=("tokens_per_step", "vocab_block"))
def token_embedding(token_ids: jax.Array,
                    emb_table: jax.Array,
                    *,
                    tokens_per_step: int = 256,
                    vocab_block: int = 2048) -> jax.Array:
    """Pallas equivalent of nn.Embedding(vocab_size, d_model)(token_ids)."""
    batch, seq = token_ids.shape
    vocab_size, d_model = emb_table.shape
    n_tokens = batch * seq

    # Tokens per grid step: sublane-dense (multiple of 8), capped.
    t = min(tokens_per_step, _round_up(n_tokens, 8))
    t = _round_up(t, 8)
    n_padded = _round_up(n_tokens, t)
    n_steps = n_padded // t

    # Vocab rows per grid step (multiple of 8); small vocabs fit in one block.
    tv = min(vocab_block, _round_up(vocab_size, 8))
    tv = _round_up(tv, 8)
    v_padded = _round_up(vocab_size, tv)
    n_vblocks = v_padded // tv

    # Clamp ids (an id >= vocab_size would otherwise select a wrong/padded row)
    # and pad the flattened token axis to a whole number of grid steps.
    flat_ids = jnp.clip(token_ids.reshape(n_tokens).astype(jnp.int32),
                        0, vocab_size - 1)
    flat_ids = jnp.pad(flat_ids, (0, n_padded - n_tokens))
    ids_col = flat_ids.reshape(n_padded, 1)   # ids along the sublane axis

    table = emb_table
    if v_padded != vocab_size:
        table = jnp.pad(emb_table, ((0, v_padded - vocab_size), (0, 0)))

    # VMEM budget: double-buffered table blocks + output blocks + id blocks +
    # f32 accumulator + headroom.  Capped at 64 MiB (v7x physical VMEM).
    itemsize = jnp.dtype(emb_table.dtype).itemsize
    vmem_need = (2 * tv * d_model * itemsize        # table blocks
                 + 2 * t * d_model * itemsize       # output blocks
                 + 2 * t * 128 * 4                  # id blocks (lane-padded)
                 + t * d_model * 4                  # accumulator
                 + (1 << 20))                       # headroom
    vmem_limit = int(min(max(vmem_need, 32 * 1024 * 1024), 64 * 1024 * 1024))

    grid_spec = pltpu.PrefetchScalarGridSpec(
        num_scalar_prefetch=0,
        grid=(n_steps, n_vblocks),
        in_specs=[
            # Token ids for this token block (revisited across vocab blocks).
            pl.BlockSpec((t, 1), lambda i, j: (i, 0)),
            # Current vocab block of the embedding table.
            pl.BlockSpec((tv, d_model), lambda i, j: (j, 0)),
        ],
        out_specs=pl.BlockSpec((t, d_model), lambda i, j: (i, 0)),
        scratch_shapes=[pltpu.VMEM((t, d_model), jnp.float32)],
    )

    out_flat = pl.pallas_call(
        _embed_kernel,
        grid_spec=grid_spec,
        out_shape=jax.ShapeDtypeStruct((n_padded, d_model), emb_table.dtype),
        compiler_params=pltpu.CompilerParams(
            dimension_semantics=("parallel", "arbitrary"),
            vmem_limit_bytes=vmem_limit,
        ),
    )(ids_col, table)

    return out_flat[:n_tokens].reshape(batch, seq, d_model)


if __name__ == "__main__":
    vocab_size = 64
    d_model = 128
    batch = 2
    seq = 8

    key = jax.random.PRNGKey(0)
    k_emb, k_ids = jax.random.split(key)

    # nn.Embedding default init: weight ~ N(0, 1)
    emb_table = jax.random.normal(k_emb, (vocab_size, d_model), dtype=jnp.float32)
    token_ids = jax.random.randint(k_ids, (batch, seq), 0, vocab_size, dtype=jnp.int32)

    out = token_embedding(token_ids, emb_table)
    out = jax.block_until_ready(out)

    # Reference check against plain JAX gather (same semantics as nn.Embedding).
    ref = emb_table[token_ids]
    assert out.shape == (batch, seq, d_model)
    assert jnp.allclose(out, ref), "Pallas embedding lookup mismatch"

    print("KERNEL_OK")
</pallas_src>

<mosaic_0001>
module attributes {stable_mosaic.version = 11 : i64} {
  func.func @_embed_kernel(%arg0: i32, %arg1: i32, %arg2: memref<16x1xi32, #tpu.memory_space<vmem>>, %arg3: memref<64x128xf32, #tpu.memory_space<vmem>>, %arg4: memref<16x128xf32, #tpu.memory_space<vmem>>, %arg5: memref<16x128xf32, #tpu.memory_space<vmem>>) attributes {dimension_semantics = [#tpu.dimension_semantics<parallel>, #tpu.dimension_semantics<arbitrary>], iteration_bounds = array<i64: 1, 1>, scalar_prefetch = 0 : i64, scratch_operands = 1 : i64, tpu.core_type = #tpu.core_type<tc>, window_params = [{transform_indices = @transform_0, window_bounds = array<i64: 16, 1>}, {transform_indices = @transform_1, window_bounds = array<i64: 64, 128>}, {transform_indices = @transform_2, window_bounds = array<i64: 16, 128>}]} {
    %c0_i32 = arith.constant 0 : i32
    %0 = arith.cmpi eq, %arg1, %c0_i32 : i32
    %1 = arith.extui %0 : i1 to i32
    %c0_i32_0 = arith.constant 0 : i32
    %2 = arith.cmpi ne, %1, %c0_i32_0 : i32
    scf.if %2 {
      %cst_10 = arith.constant 0.000000e+00 : f32
      %20 = vector.broadcast %cst_10 : f32 to vector<16x128xf32>
      %c0_11 = arith.constant 0 : index
      %c0_12 = arith.constant 0 : index
      %21 = vector.load %arg5[%c0_11, %c0_12] : memref<16x128xf32, #tpu.memory_space<vmem>>, vector<16x128xf32>
      tpu.vector_store %arg5[%c0_11, %c0_12], %20 {strides = array<i32>} : memref<16x128xf32, #tpu.memory_space<vmem>>, vector<16x128xf32>,
    } else {
    }
    %c0 = arith.constant 0 : index
    %c0_1 = arith.constant 0 : index
    %3 = vector.load %arg2[%c0, %c0_1] : memref<16x1xi32, #tpu.memory_space<vmem>>, vector<16x1xi32>
    %c64_i32 = arith.constant 64 : i32
    %4 = arith.muli %arg1, %c64_i32 : i32
    %5 = tpu.iota {dimensions = array<i32: 1>} : vector<16x64xi32>
    %6 = vector.broadcast %4 : i32 to vector<16x64xi32>
    %7 = arith.addi %6, %5 : vector<16x64xi32>
    %8 = vector.broadcast %3 : vector<16x1xi32> to vector<16x64xi32>
    %9 = arith.cmpi eq, %7, %8 : vector<16x64xi32>
    %10 = arith.extui %9 : vector<16x64xi1> to vector<16x64xi32>
    %11 = arith.sitofp %10 : vector<16x64xi32> to vector<16x64xf32>
    %c0_2 = arith.constant 0 : index
    %c0_3 = arith.constant 0 : index
    %12 = vector.load %arg5[%c0_2, %c0_3] : memref<16x128xf32, #tpu.memory_space<vmem>>, vector<16x128xf32>
    %c0_4 = arith.constant 0 : index
    %c0_5 = arith.constant 0 : index
    %13 = vector.load %arg3[%c0_4, %c0_5] : memref<64x128xf32, #tpu.memory_space<vmem>>, vector<64x128xf32>
    %cst = arith.constant dense<0.000000e+00> : vector<16x128xf32>
    %14 = tpu.matmul %11, %13, %cst {dimension_numbers = #tpu.dot_dimension_numbers<[1], [0], [0], [1], [0, 0, 1, 1], [], []>} : vector<16x64xf32>, vector<64x128xf32>, vector<16x128xf32> -> vector<16x128xf32>
    %15 = arith.addf %12, %14 : vector<16x128xf32>
    %c0_6 = arith.constant 0 : index
    %c0_7 = arith.constant 0 : index
    %16 = vector.load %arg5[%c0_6, %c0_7] : memref<16x128xf32, #tpu.memory_space<vmem>>, vector<16x128xf32>
    tpu.vector_store %arg5[%c0_6, %c0_7], %15 {strides = array<i32>} : memref<16x128xf32, #tpu.memory_space<vmem>>, vector<16x128xf32>,
    %c0_i32_8 = arith.constant 0 : i32
    %17 = arith.cmpi eq, %arg1, %c0_i32_8 : i32
    %18 = arith.extui %17 : i1 to i32
    %c0_i32_9 = arith.constant 0 : i32
    %19 = arith.cmpi ne, %18, %c0_i32_9 : i32
    scf.if %19 {
      %c0_10 = arith.constant 0 : index
      %c0_11 = arith.constant 0 : index
      %20 = vector.load %arg5[%c0_10, %c0_11] : memref<16x128xf32, #tpu.memory_space<vmem>>, vector<16x128xf32>
      %c0_12 = arith.constant 0 : index
      %c0_13 = arith.constant 0 : index
      %21 = vector.load %arg4[%c0_12, %c0_13] : memref<16x128xf32, #tpu.memory_space<vmem>>, vector<16x128xf32>
      tpu.vector_store %arg4[%c0_12, %c0_13], %20 {strides = array<i32>} : memref<16x128xf32, #tpu.memory_space<vmem>>, vector<16x128xf32>,
    } else {
    }
    return
  }
  func.func @transform_0(%arg0: i32, %arg1: i32) -> (i32, i32) {
    %c0_i32 = arith.constant 0 : i32
    %c0_i32_0 = arith.constant 0 : i32
    return %arg0, %c0_i32 : i32, i32
  }
  func.func @transform_1(%arg0: i32, %arg1: i32) -> (i32, i32) {
    %c0_i32 = arith.constant 0 : i32
    %c0_i32_0 = arith.constant 0 : i32
    return %arg1, %c0_i32 : i32, i32
  }
  func.func @transform_2(%arg0: i32, %arg1: i32) -> (i32, i32) {
    %c0_i32 = arith.constant 0 : i32
    %c0_i32_0 = arith.constant 0 : i32
    return %arg0, %c0_i32 : i32, i32
  }
}

</mosaic_0001>

<bundles_post_ra>
// kernel: token_embedding.1
= control target key start
LH: loop header
LB: loop body
LE: loop exit
PB: predicated region body
PF: predicated region fallthrough
CT: control target
= control target key end

     0   :  { %7 = vsyncpa [#allocation4], 0  ;;  %s332_s0 = inlined_call_operand.vmem [shape: s32[16,1], index: 0, kind: input, shape index: {}]   ;;  %s333_s1 = inlined_call_operand.hbm [shape: f32[64,128], index: 1, kind: input, shape index: {}]   ;;  %s334_s2 = inlined_call_operand.hbm [shape: f32[16,128], index: 2, kind: output, shape index: {}]  }
   0x1   :  { %8 = vsyncpa [#allocation5], 0  ;;  %s275_s9 = smov [#allocation3]   ;;  %s227_s13 = scalar_lea.hbm %s333_s1, 1024 }
   0x2   :  { %s16_s10 = sshll.u32 %s275_s9, 4  ;;  %p228_p0 = scmp.ne.s32.totalorder %s333_s1, %s227_s13  ;;  %s17_s10 = int_to_ptr.vmem [resolvable:$true] %s16_s10 }
   0x3   :  { %p231_p1 = scmp.lt.u32.totalorder %s227_s13, %s333_s1 }
   0x5   :  { %p233_p2 = pnand %p231_p1, %p228_p0 }
   0x7   :  { %236 = shalt.err (!%p233_p2)
}
   0x8   :  { %s237_s18 = scalar_lea.vmem %s17_s10, 1024  ;;  %p242_p4 = scmp.lt.s32.totalorder %s17_s10, %s17_s10 }
   0x9   :  { %p238_p3 = scmp.ne.s32.totalorder %s17_s10, %s237_s18  ;;  %p243_p5 = scmp.lt.s32.totalorder %s237_s18, %s237_s18 }
   0xb   :  { %p244_p6 = por %p243_p5, %p242_p4 }
   0xd   :  { %p245_p7 = pnand %p244_p6, %p238_p3 }
   0xf   :  { %248 = shalt.err (!%p245_p7)
}
  0x10   :  { %s276_s19 = smov 128   ;;  %s277_s20 = smov 8  }
  0x11   :  { %22 = dma.hbm_to_vmem [thread:$0]  %s333_s1, 1024, %s17_s10, [#allocation4], %s276_s19, %s276_s19, %s277_s20  }
  0x12   :  { %271 = dma.done.wait [#allocation4], 1024  }
  0x13   :  { %272 = vsyncadd [#allocation4], 4294966272  ;;  %v278_v0 = vmov 0   ;;  %v32_v1 = vld [vmem:[%s332_s0] sm:$0xff]  ;;  %v54_v3 = vld [vmem:[#allocation3 + $0x8] sm:$0xff]  ;;  %v35_v15 = vlaneseq  ;;  %vm61_vm0 = vcmask 523264  }
  0x14   :  { %226 = vset.pattern.permute.xlu0 %v278_v0  ;;  %v53_v2 = vld [vmem:[#allocation3] sm:$0xff]  ;;  %v55_v4 = vld [vmem:[#allocation3 + $0x10] sm:$0xff]  ;;  %v56_v5 = vld [vmem:[#allocation3 + $0x18] sm:$0xff]  ;;  %v279_v18 = vmov 0.0  }
  0x15   :  { %40 = vperm.xlu0 %226, %v32_v1   ;;  %v33_v6 = vld [vmem:[%s332_s0 + $0x8] sm:$0xff]  ;;  %v204_v7 = vpack.c.bf16 %v54_v3, %v53_v2  ;;  %v208_v8 = vpack.c.bf16 %v56_v5, %v55_v4  ;;  %v57_v9 = vld [vmem:[#allocation3 + $0x20] sm:$0xff]  ;;  %v59_v12 = vld [vmem:[#allocation3 + $0x30] sm:$0xff]  ;;  %v36_v16 = vand.u32 127, %v35_v15  ;;  %s280_s0 = smov [#allocation6]  }
  0x16   :  { %v58_v10 = vld [vmem:[#allocation3 + $0x28] sm:$0xff]  ;;  %v60_v13 = vld [vmem:[#allocation3 + $0x38] sm:$0xff]  ;;  %s159_s1 = sshll.u32 %s280_s0, 4  ;;  %s160_s1 = int_to_ptr.vmem [resolvable:$true] %s159_s1 }
  0x17   :  { %205 = vmatprep.subr.bf16.mxu0 %v204_v7  ;;  %v212_v11 = vpack.c.bf16 %v58_v10, %v57_v9  ;;  %v216_v14 = vpack.c.bf16 %v60_v13, %v59_v12  ;;  %s249_s27 = scalar_lea.vmem %s160_s1, 256  ;;  %p254_p9 = scmp.lt.s32.totalorder %s160_s1, %s160_s1 }
  0x18   :  { %207 = vmatpush3.bf16.msra.mxu0 %v204_v7  ;;  %p250_p8 = scmp.ne.s32.totalorder %s160_s1, %s249_s27  ;;  %p255_p10 = scmp.lt.s32.totalorder %s249_s27, %s249_s27 }
  0x19   :  { %43 = vperm.xlu0 %226, %v33_v6   ;;  %209 = vmatprep.subr.bf16.mxu0 %v208_v8 }
  0x1a   :  { %p256_p11 = por %p255_p10, %p254_p9 }
  0x1c   :  { %211 = vmatpush3.bf16.msra.mxu0 %v208_v8  ;;  %p257_p12 = pnand %p256_p11, %p250_p8 }
  0x1d   :  { %213 = vmatprep.subr.bf16.mxu0 %v212_v11 }
  0x20   :  { %215 = vmatpush3.bf16.msra.mxu0 %v212_v11 }
  0x21   :  { %217 = vmatprep.subr.bf16.mxu0 %v216_v14 }
  0x24   :  { %219 = vmatpush3.bf16.msra.mxu0 %v216_v14 }
  0x94   :  { %v41_v17 = vpop.permute.xlu0 %40 }
  0x95   :  { %vm45_vm1 = vcmp.eq.s32.totalorder %v36_v16, %v41_v17 }
  0x96   :  { %v171_v19 = vsel %vm45_vm1, 1.0, %v279_v18 }
  0x97   :  { %201 = vmatprep.mubr.msk.f32.mxu0 %vm61_vm0, %v171_v19 }
  0x98   :  { %v44_v20 = vpop.permute.xlu0 %43 }
  0x99   :  { %vm46_vm2 = vcmp.eq.s32.totalorder %v36_v16, %v44_v20 }
  0x9a   :  { %v172_v21 = vsel %vm46_vm2, 1.0, %v279_v18 }
  0x9b   :  { %202 = vmatmul.mubr.msk.f32.vlgmr.msra.gmra.mrb[0].mxu0 %vm61_vm0, %v172_v21 }
 0x16e   :  { %v203_v22 = vpop.f32.mrb[0].mxu0 }
 0x16f   :  { %153 = vst [vmem:[#allocation6 + $0x8] sm:$0xff] %v203_v22  ;;  %v134_v23 = vpop.f32.mrb[1].mxu0 }
 0x170   :  { %152 = vst [vmem:[#allocation6] sm:$0xff] %v134_v23 }
 0x171   :  { %260 = shalt.err (!%p257_p12)
}
 0x172   :  { %s261_s30 = scalar_lea.hbm %s334_s2, 256 }
 0x173   :  { %p262_p13 = scmp.ne.s32.totalorder %s334_s2, %s261_s30  ;;  %p265_p0 = scmp.lt.u32.totalorder %s261_s30, %s334_s2 }
 0x175   :  { %p267_p1 = pnand %p265_p0, %p262_p13 }
 0x177   :  { %270 = shalt.err (!%p267_p1)
}
 0x178   :  { %165 = dma.vmem_to_hbm [thread:$0]  %s160_s1, 256, %s334_s2, [#allocation5], %s276_s19, %s276_s19, %s277_s20  }
 0x179   :  { %273 = dma.done.wait [#allocation5], 256  }
 0x17a   :  { %274 = vsyncadd [#allocation5], 4294967040 }
 0x17b   :  { %169 = vsyncpa [#allocation4], 1 }
 0x17c   :  { %170 = vsyncpa [#allocation5], 1 }

</bundles_post_ra>
